<compile_context>
chip_gen: v7x
topology: tpu7x:2x2x1
jax: 0.10.0
libtpu: 0.0.40
codegen_flags: <defaults>
</compile_context>

<pallas_src>
import functools

import jax
import jax.numpy as jnp
from jax import lax
from jax.experimental import pallas as pl
from jax.experimental.pallas import tpu as pltpu


def _barlow_twins_kernel(z1_ref, z2_ref, out_ref,
                         acc_ref, s1_ref, sq1_ref, s2_ref, sq2_ref, s12_ref,
                         *, batch_size, lambda_coeff, z_dim, eps):
    i = pl.program_id(0)
    j = pl.program_id(1)
    k = pl.program_id(2)
    nk = pl.num_programs(2)

    # Zero the resident scalar accumulator once, at the very first grid step.
    @pl.when((i == 0) & (j == 0) & (k == 0))
    def _init_out():
        out_ref[0, 0] = jnp.float32(0.0)

    # Zero the per-(i, j) tile accumulators at the start of each batch sweep.
    @pl.when(k == 0)
    def _init_scratch():
        acc_ref[...] = jnp.zeros_like(acc_ref)
        s1_ref[...] = jnp.zeros_like(s1_ref)
        sq1_ref[...] = jnp.zeros_like(sq1_ref)
        s2_ref[...] = jnp.zeros_like(s2_ref)
        sq2_ref[...] = jnp.zeros_like(sq2_ref)
        s12_ref[...] = jnp.zeros_like(s12_ref)

    z1 = z1_ref[...].astype(jnp.float32)   # (tk, tm)
    z2 = z2_ref[...].astype(jnp.float32)   # (tk, tn)

    # Partial Gram tile: contract the batch axis directly on the MXU.
    acc_ref[...] += lax.dot_general(
        z1, z2, dimension_numbers=(((0,), (0,)), ((), ())),
        preferred_element_type=jnp.float32)

    # Column statistics for mean / unbiased std of each feature column.
    s1_ref[...] += jnp.sum(z1, axis=0, keepdims=True)
    sq1_ref[...] += jnp.sum(z1 * z1, axis=0, keepdims=True)
    s2_ref[...] += jnp.sum(z2, axis=0, keepdims=True)
    sq2_ref[...] += jnp.sum(z2 * z2, axis=0, keepdims=True)
    # Per-column cross sums; only consumed on diagonal tiles (i == j).
    s12_ref[...] += jnp.sum(z1 * z2, axis=0, keepdims=True)

    @pl.when(k == nk - 1)
    def _finalize():
        b = jnp.float32(batch_size)
        # NOTE: matches torch.std (unbiased, n-1); batch_size == 1 yields
        # nan exactly like the PyTorch module would.
        m1 = s1_ref[...] / b                                        # (1, tm)
        m2 = s2_ref[...] / b                                        # (1, tn)
        var1 = jnp.maximum(sq1_ref[...] - b * m1 * m1, 0.0) / (b - 1.0)
        var2 = jnp.maximum(sq2_ref[...] - b * m2 * m2, 0.0) / (b - 1.0)
        a1 = 1.0 / (jnp.sqrt(var1) + eps)                           # 1/(std1+eps)
        a2 = 1.0 / (jnp.sqrt(var2) + eps)                           # 1/(std2+eps)

        # Outer products via K=1 dot_general (avoids any (1,t)->(t,1) relayout).
        outer_m = lax.dot_general(
            m1, m2, dimension_numbers=(((0,), (0,)), ((), ())),
            preferred_element_type=jnp.float32)                     # (tm, tn)
        outer_a = lax.dot_general(
            a1, a2, dimension_numbers=(((0,), (0,)), ((), ())),
            preferred_element_type=jnp.float32)                     # (tm, tn)

        # cc[p,q] = (Gram[p,q] - B*m1[p]*m2[q]) * a1[p]*a2[q] / B
        cc = (acc_ref[...] - b * outer_m) * outer_a / b
        tile_sq = jnp.sum(cc * cc)

        # Diagonal of cc directly from per-column sums (valid when i == j).
        diag = (s12_ref[...] - b * m1 * m2) * (a1 * a2) / b         # (1, tm)
        on_diag = jnp.sum((diag - 1.0) ** 2)
        diag_sq = jnp.sum(diag * diag)

        contrib = jnp.where(
            i == j,
            on_diag + lambda_coeff * (tile_sq - diag_sq),
            lambda_coeff * tile_sq)
        out_ref[0, 0] += contrib / z_dim


def _feature_tile(d, pref=512):
    # Largest multiple of 128 <= pref that divides D, else the full dim.
    if d % 128 != 0 or d <= pref:
        return d
    t = pref
    while d % t != 0:
        t -= 128
    return t


def _batch_tile(b, pref=256):
    # Largest multiple of 8 <= pref that divides B, else the full dim.
    if b % 8 != 0 or b <= pref:
        return b
    t = pref
    while b % t != 0:
        t -= 8
    return t


def barlow_twins_loss(z1, z2, *, batch_size, lambda_coeff=0.005, z_dim=128,
                      eps=1e-5, feature_tile=None, batch_tile=None):
    assert z1.shape == z2.shape == (batch_size, z_dim)
    B, D = z1.shape

    tm = tn = feature_tile if feature_tile is not None else _feature_tile(D)
    tk = batch_tile if batch_tile is not None else _batch_tile(B)
    assert D % tm == 0 and B % tk == 0

    n_i, n_j, n_k = D // tm, D // tn, B // tk

    kernel = functools.partial(
        _barlow_twins_kernel,
        batch_size=float(batch_size),
        lambda_coeff=float(lambda_coeff),
        z_dim=float(z_dim),
        eps=float(eps),
    )

    cost = pl.CostEstimate(
        flops=2 * B * D * D + 6 * n_i * n_j * tm * tn,
        transcendentals=n_i * n_j * (tm + tn),
        bytes_accessed=4 * B * D * (n_i + n_j) + 4,
    )

    out = pl.pallas_call(
        kernel,
        out_shape=jax.ShapeDtypeStruct((1, 1), jnp.float32),
        grid_spec=pltpu.PrefetchScalarGridSpec(
            num_scalar_prefetch=0,
            grid=(n_i, n_j, n_k),
            in_specs=[
                pl.BlockSpec((tk, tm), lambda i, j, k: (k, i)),
                pl.BlockSpec((tk, tn), lambda i, j, k: (k, j)),
            ],
            out_specs=pl.BlockSpec((1, 1), lambda i, j, k: (0, 0),
                                   memory_space=pltpu.SMEM),
            scratch_shapes=[
                pltpu.VMEM((tm, tn), jnp.float32),   # Gram tile accumulator
                pltpu.VMEM((1, tm), jnp.float32),    # sum(z1)
                pltpu.VMEM((1, tm), jnp.float32),    # sum(z1^2)
                pltpu.VMEM((1, tn), jnp.float32),    # sum(z2)
                pltpu.VMEM((1, tn), jnp.float32),    # sum(z2^2)
                pltpu.VMEM((1, tm), jnp.float32),    # sum(z1*z2) (diag tiles)
            ],
        ),
        compiler_params=pltpu.CompilerParams(
            # Scalar loss accumulates across ALL grid axes -> every axis is a
            # reduction axis for the output; must stay "arbitrary".
            dimension_semantics=("arbitrary", "arbitrary", "arbitrary")),
        cost_estimate=cost,
    )(z1, z2)
    return out[0, 0]


def _reference_loss(z1, z2, batch_size, lambda_coeff, z_dim, eps):
    # Pure-JAX reference mirroring the PyTorch forward.
    def norm(z):
        mean = jnp.mean(z, axis=0)
        std = jnp.std(z, axis=0, ddof=1)  # torch.std is unbiased
        return (z - mean) / (std + eps)

    z1n, z2n = norm(z1), norm(z2)
    cc = (z1n.T @ z2n) / batch_size
    on_diag = jnp.sum((jnp.diagonal(cc) - 1.0) ** 2)
    off_diag = jnp.sum(cc ** 2) - jnp.sum(jnp.diagonal(cc) ** 2)
    return (on_diag + lambda_coeff * off_diag) / z_dim


if __name__ == "__main__":
    batch_size = 16
    z_dim = 256
    lambda_coeff = 0.005
    eps = 1e-5

    key = jax.random.PRNGKey(0)
    k1, k2 = jax.random.split(key)
    z1 = jax.random.normal(k1, (batch_size, z_dim), dtype=jnp.float32)
    z2 = jax.random.normal(k2, (batch_size, z_dim), dtype=jnp.float32)

    # Small explicit tiles so the demo exercises the full (2, 2, 2) grid:
    # diagonal tiles, off-diagonal tiles and batch-axis accumulation.
    loss = barlow_twins_loss(
        z1, z2, batch_size=batch_size, lambda_coeff=lambda_coeff,
        z_dim=z_dim, eps=eps, feature_tile=128, batch_tile=8)
    loss = jax.block_until_ready(loss)

    ref = _reference_loss(z1, z2, batch_size, lambda_coeff, z_dim, eps)
    assert jnp.allclose(loss, ref, rtol=1e-4, atol=1e-4), (loss, ref)

    print("KERNEL_OK")
</pallas_src>

<mosaic_0001>
module attributes {stable_mosaic.version = 11 : i64} {
  func.func @_barlow_twins_kernel(%arg0: i32, %arg1: i32, %arg2: i32, %arg3: memref<8x128xf32, #tpu.memory_space<vmem>>, %arg4: memref<8x128xf32, #tpu.memory_space<vmem>>, %arg5: memref<1x1xf32, #tpu.memory_space<smem>>, %arg6: memref<128x128xf32, #tpu.memory_space<vmem>>, %arg7: memref<1x128xf32, #tpu.memory_space<vmem>>, %arg8: memref<1x128xf32, #tpu.memory_space<vmem>>, %arg9: memref<1x128xf32, #tpu.memory_space<vmem>>, %arg10: memref<1x128xf32, #tpu.memory_space<vmem>>, %arg11: memref<1x128xf32, #tpu.memory_space<vmem>>) attributes {dimension_semantics = [#tpu.dimension_semantics<arbitrary>, #tpu.dimension_semantics<arbitrary>, #tpu.dimension_semantics<arbitrary>], iteration_bounds = array<i64: 2, 2, 2>, scalar_prefetch = 0 : i64, scratch_operands = 6 : i64, tpu.core_type = #tpu.core_type<tc>, window_params = [{transform_indices = @transform_0, window_bounds = array<i64: 8, 128>}, {transform_indices = @transform_1, window_bounds = array<i64: 8, 128>}, {transform_indices = @transform_2, window_bounds = array<i64: 1, 1>}]} {
    %c0_i32 = arith.constant 0 : i32
    %0 = arith.cmpi eq, %arg0, %c0_i32 : i32
    %c0_i32_0 = arith.constant 0 : i32
    %1 = arith.cmpi eq, %arg1, %c0_i32_0 : i32
    %2 = arith.andi %0, %1 : i1
    %c0_i32_1 = arith.constant 0 : i32
    %3 = arith.cmpi eq, %arg2, %c0_i32_1 : i32
    %4 = arith.andi %2, %3 : i1
    %5 = arith.extui %4 : i1 to i32
    %c0_i32_2 = arith.constant 0 : i32
    %6 = arith.cmpi ne, %5, %c0_i32_2 : i32
    scf.if %6 {
      %cst_38 = arith.constant 0.000000e+00 : f32
      %c0_39 = arith.constant 0 : index
      %c0_40 = arith.constant 0 : index
      %47 = memref.load %arg5[%c0_39, %c0_40] : memref<1x1xf32, #tpu.memory_space<smem>>
      memref.store %cst_38, %arg5[%c0_39, %c0_40] : memref<1x1xf32, #tpu.memory_space<smem>>
    } else {
    }
    %c0_i32_3 = arith.constant 0 : i32
    %7 = arith.cmpi eq, %arg2, %c0_i32_3 : i32
    %8 = arith.extui %7 : i1 to i32
    %c0_i32_4 = arith.constant 0 : i32
    %9 = arith.cmpi ne, %8, %c0_i32_4 : i32
    scf.if %9 {
      %cst_38 = arith.constant 0.000000e+00 : f32
      %47 = vector.broadcast %cst_38 : f32 to vector<128x128xf32>
      %c0_39 = arith.constant 0 : index
      %c0_40 = arith.constant 0 : index
      %48 = vector.load %arg6[%c0_39, %c0_40] : memref<128x128xf32, #tpu.memory_space<vmem>>, vector<128x128xf32>
      tpu.vector_store %arg6[%c0_39, %c0_40], %47 {strides = array<i32>} : memref<128x128xf32, #tpu.memory_space<vmem>>, vector<128x128xf32>,
      %cst_41 = arith.constant 0.000000e+00 : f32
      %49 = vector.broadcast %cst_41 : f32 to vector<1x128xf32>
      %c0_42 = arith.constant 0 : index
      %c0_43 = arith.constant 0 : index
      %50 = vector.load %arg7[%c0_42, %c0_43] : memref<1x128xf32, #tpu.memory_space<vmem>>, vector<1x128xf32>
      tpu.vector_store %arg7[%c0_42, %c0_43], %49 {strides = array<i32>} : memref<1x128xf32, #tpu.memory_space<vmem>>, vector<1x128xf32>,
      %cst_44 = arith.constant 0.000000e+00 : f32
      %51 = vector.broadcast %cst_44 : f32 to vector<1x128xf32>
      %c0_45 = arith.constant 0 : index
      %c0_46 = arith.constant 0 : index
      %52 = vector.load %arg8[%c0_45, %c0_46] : memref<1x128xf32, #tpu.memory_space<vmem>>, vector<1x128xf32>
      tpu.vector_store %arg8[%c0_45, %c0_46], %51 {strides = array<i32>} : memref<1x128xf32, #tpu.memory_space<vmem>>, vector<1x128xf32>,
      %cst_47 = arith.constant 0.000000e+00 : f32
      %53 = vector.broadcast %cst_47 : f32 to vector<1x128xf32>
      %c0_48 = arith.constant 0 : index
      %c0_49 = arith.constant 0 : index
      %54 = vector.load %arg9[%c0_48, %c0_49] : memref<1x128xf32, #tpu.memory_space<vmem>>, vector<1x128xf32>
      tpu.vector_store %arg9[%c0_48, %c0_49], %53 {strides = array<i32>} : memref<1x128xf32, #tpu.memory_space<vmem>>, vector<1x128xf32>,
      %cst_50 = arith.constant 0.000000e+00 : f32
      %55 = vector.broadcast %cst_50 : f32 to vector<1x128xf32>
      %c0_51 = arith.constant 0 : index
      %c0_52 = arith.constant 0 : index
      %56 = vector.load %arg10[%c0_51, %c0_52] : memref<1x128xf32, #tpu.memory_space<vmem>>, vector<1x128xf32>
      tpu.vector_store %arg10[%c0_51, %c0_52], %55 {strides = array<i32>} : memref<1x128xf32, #tpu.memory_space<vmem>>, vector<1x128xf32>,
      %cst_53 = arith.constant 0.000000e+00 : f32
      %57 = vector.broadcast %cst_53 : f32 to vector<1x128xf32>
      %c0_54 = arith.constant 0 : index
      %c0_55 = arith.constant 0 : index
      %58 = vector.load %arg11[%c0_54, %c0_55] : memref<1x128xf32, #tpu.memory_space<vmem>>, vector<1x128xf32>
      tpu.vector_store %arg11[%c0_54, %c0_55], %57 {strides = array<i32>} : memref<1x128xf32, #tpu.memory_space<vmem>>, vector<1x128xf32>,
    } else {
    }
    %c0 = arith.constant 0 : index
    %c0_5 = arith.constant 0 : index
    %10 = vector.load %arg3[%c0, %c0_5] : memref<8x128xf32, #tpu.memory_space<vmem>>, vector<8x128xf32>
    %c0_6 = arith.constant 0 : index
    %c0_7 = arith.constant 0 : index
    %11 = vector.load %arg4[%c0_6, %c0_7] : memref<8x128xf32, #tpu.memory_space<vmem>>, vector<8x128xf32>
    %c0_8 = arith.constant 0 : index
    %c0_9 = arith.constant 0 : index
    %12 = vector.load %arg6[%c0_8, %c0_9] : memref<128x128xf32, #tpu.memory_space<vmem>>, vector<128x128xf32>
    %cst = arith.constant dense<0.000000e+00> : vector<128x128xf32>
    %13 = tpu.matmul %10, %11, %cst {dimension_numbers = #tpu.dot_dimension_numbers<[0], [0], [1], [1], [0, 1, 1, 1], [], []>} : vector<8x128xf32>, vector<8x128xf32>, vector<128x128xf32> -> vector<128x128xf32>
    %14 = arith.addf %12, %13 : vector<128x128xf32>
    %c0_10 = arith.constant 0 : index
    %c0_11 = arith.constant 0 : index
    %15 = vector.load %arg6[%c0_10, %c0_11] : memref<128x128xf32, #tpu.memory_space<vmem>>, vector<128x128xf32>
    tpu.vector_store %arg6[%c0_10, %c0_11], %14 {strides = array<i32>} : memref<128x128xf32, #tpu.memory_space<vmem>>, vector<128x128xf32>,
    %c0_12 = arith.constant 0 : index
    %c0_13 = arith.constant 0 : index
    %16 = vector.load %arg7[%c0_12, %c0_13] : memref<1x128xf32, #tpu.memory_space<vmem>>, vector<1x128xf32>
    %cst_14 = arith.constant dense<0.000000e+00> : vector<128xf32>
    %17 = vector.multi_reduction <add>, %10, %cst_14 [0] : vector<8x128xf32> to vector<128xf32>
    %18 = vector.shape_cast %17 : vector<128xf32> to vector<1x128xf32>
    %19 = arith.addf %16, %18 : vector<1x128xf32>
    %c0_15 = arith.constant 0 : index
    %c0_16 = arith.constant 0 : index
    %20 = vector.load %arg7[%c0_15, %c0_16] : memref<1x128xf32, #tpu.memory_space<vmem>>, vector<1x128xf32>
    tpu.vector_store %arg7[%c0_15, %c0_16], %19 {strides = array<i32>} : memref<1x128xf32, #tpu.memory_space<vmem>>, vector<1x128xf32>,
    %c0_17 = arith.constant 0 : index
    %c0_18 = arith.constant 0 : index
    %21 = vector.load %arg8[%c0_17, %c0_18] : memref<1x128xf32, #tpu.memory_space<vmem>>, vector<1x128xf32>
    %22 = arith.mulf %10, %10 : vector<8x128xf32>
    %cst_19 = arith.constant dense<0.000000e+00> : vector<128xf32>
    %23 = vector.multi_reduction <add>, %22, %cst_19 [0] : vector<8x128xf32> to vector<128xf32>
    %24 = vector.shape_cast %23 : vector<128xf32> to vector<1x128xf32>
    %25 = arith.addf %21, %24 : vector<1x128xf32>
    %c0_20 = arith.constant 0 : index
    %c0_21 = arith.constant 0 : index
    %26 = vector.load %arg8[%c0_20, %c0_21] : memref<1x128xf32, #tpu.memory_space<vmem>>, vector<1x128xf32>
    tpu.vector_store %arg8[%c0_20, %c0_21], %25 {strides = array<i32>} : memref<1x128xf32, #tpu.memory_space<vmem>>, vector<1x128xf32>,
    %c0_22 = arith.constant 0 : index
    %c0_23 = arith.constant 0 : index
    %27 = vector.load %arg9[%c0_22, %c0_23] : memref<1x128xf32, #tpu.memory_space<vmem>>, vector<1x128xf32>
    %cst_24 = arith.constant dense<0.000000e+00> : vector<128xf32>
    %28 = vector.multi_reduction <add>, %11, %cst_24 [0] : vector<8x128xf32> to vector<128xf32>
    %29 = vector.shape_cast %28 : vector<128xf32> to vector<1x128xf32>
    %30 = arith.addf %27, %29 : vector<1x128xf32>
    %c0_25 = arith.constant 0 : index
    %c0_26 = arith.constant 0 : index
    %31 = vector.load %arg9[%c0_25, %c0_26] : memref<1x128xf32, #tpu.memory_space<vmem>>, vector<1x128xf32>
    tpu.vector_store %arg9[%c0_25, %c0_26], %30 {strides = array<i32>} : memref<1x128xf32, #tpu.memory_space<vmem>>, vector<1x128xf32>,
    %c0_27 = arith.constant 0 : index
    %c0_28 = arith.constant 0 : index
    %32 = vector.load %arg10[%c0_27, %c0_28] : memref<1x128xf32, #tpu.memory_space<vmem>>, vector<1x128xf32>
    %33 = arith.mulf %11, %11 : vector<8x128xf32>
    %cst_29 = arith.constant dense<0.000000e+00> : vector<128xf32>
    %34 = vector.multi_reduction <add>, %33, %cst_29 [0] : vector<8x128xf32> to vector<128xf32>
    %35 = vector.shape_cast %34 : vector<128xf32> to vector<1x128xf32>
    %36 = arith.addf %32, %35 : vector<1x128xf32>
    %c0_30 = arith.constant 0 : index
    %c0_31 = arith.constant 0 : index
    %37 = vector.load %arg10[%c0_30, %c0_31] : memref<1x128xf32, #tpu.memory_space<vmem>>, vector<1x128xf32>
    tpu.vector_store %arg10[%c0_30, %c0_31], %36 {strides = array<i32>} : memref<1x128xf32, #tpu.memory_space<vmem>>, vector<1x128xf32>,
    %c0_32 = arith.constant 0 : index
    %c0_33 = arith.constant 0 : index
    %38 = vector.load %arg11[%c0_32, %c0_33] : memref<1x128xf32, #tpu.memory_space<vmem>>, vector<1x128xf32>
    %39 = arith.mulf %10, %11 : vector<8x128xf32>
    %cst_34 = arith.constant dense<0.000000e+00> : vector<128xf32>
    %40 = vector.multi_reduction <add>, %39, %cst_34 [0] : vector<8x128xf32> to vector<128xf32>
    %41 = vector.shape_cast %40 : vector<128xf32> to vector<1x128xf32>
    %42 = arith.addf %38, %41 : vector<1x128xf32>
    %c0_35 = arith.constant 0 : index
    %c0_36 = arith.constant 0 : index
    %43 = vector.load %arg11[%c0_35, %c0_36] : memref<1x128xf32, #tpu.memory_space<vmem>>, vector<1x128xf32>
    tpu.vector_store %arg11[%c0_35, %c0_36], %42 {strides = array<i32>} : memref<1x128xf32, #tpu.memory_space<vmem>>, vector<1x128xf32>,
    %c1_i32 = arith.constant 1 : i32
    %44 = arith.cmpi eq, %arg2, %c1_i32 : i32
    %45 = arith.extui %44 : i1 to i32
    %c0_i32_37 = arith.constant 0 : i32
    %46 = arith.cmpi ne, %45, %c0_i32_37 : i32
    scf.if %46 {
      %c0_38 = arith.constant 0 : index
      %c0_39 = arith.constant 0 : index
      %47 = vector.load %arg7[%c0_38, %c0_39] : memref<1x128xf32, #tpu.memory_space<vmem>>, vector<1x128xf32>
      %cst_40 = arith.constant 1.600000e+01 : f32
      %48 = vector.broadcast %cst_40 : f32 to vector<1x128xf32>
      %49 = arith.divf %47, %48 : vector<1x128xf32>
      %c0_41 = arith.constant 0 : index
      %c0_42 = arith.constant 0 : index
      %50 = vector.load %arg9[%c0_41, %c0_42] : memref<1x128xf32, #tpu.memory_space<vmem>>, vector<1x128xf32>
      %cst_43 = arith.constant 1.600000e+01 : f32
      %51 = vector.broadcast %cst_43 : f32 to vector<1x128xf32>
      %52 = arith.divf %50, %51 : vector<1x128xf32>
      %c0_44 = arith.constant 0 : index
      %c0_45 = arith.constant 0 : index
      %53 = vector.load %arg8[%c0_44, %c0_45] : memref<1x128xf32, #tpu.memory_space<vmem>>, vector<1x128xf32>
      %cst_46 = arith.constant 1.600000e+01 : f32
      %54 = vector.broadcast %cst_46 : f32 to vector<1x128xf32>
      %55 = arith.mulf %54, %49 : vector<1x128xf32>
      %56 = arith.mulf %55, %49 : vector<1x128xf32>
      %57 = arith.subf %53, %56 : vector<1x128xf32>
      %cst_47 = arith.constant 0.000000e+00 : f32
      %58 = vector.broadcast %cst_47 : f32 to vector<1x128xf32>
      %59 = arith.maximumf %57, %58 : vector<1x128xf32>
      %cst_48 = arith.constant 1.600000e+01 : f32
      %cst_49 = arith.constant 1.000000e+00 : f32
      %60 = arith.subf %cst_48, %cst_49 : f32
      %61 = vector.broadcast %60 : f32 to vector<1x128xf32>
      %62 = arith.divf %59, %61 : vector<1x128xf32>
      %c0_50 = arith.constant 0 : index
      %c0_51 = arith.constant 0 : index
      %63 = vector.load %arg10[%c0_50, %c0_51] : memref<1x128xf32, #tpu.memory_space<vmem>>, vector<1x128xf32>
      %cst_52 = arith.constant 1.600000e+01 : f32
      %64 = vector.broadcast %cst_52 : f32 to vector<1x128xf32>
      %65 = arith.mulf %64, %52 : vector<1x128xf32>
      %66 = arith.mulf %65, %52 : vector<1x128xf32>
      %67 = arith.subf %63, %66 : vector<1x128xf32>
      %cst_53 = arith.constant 0.000000e+00 : f32
      %68 = vector.broadcast %cst_53 : f32 to vector<1x128xf32>
      %69 = arith.maximumf %67, %68 : vector<1x128xf32>
      %cst_54 = arith.constant 1.600000e+01 : f32
      %cst_55 = arith.constant 1.000000e+00 : f32
      %70 = arith.subf %cst_54, %cst_55 : f32
      %71 = vector.broadcast %70 : f32 to vector<1x128xf32>
      %72 = arith.divf %69, %71 : vector<1x128xf32>
      %73 = math.sqrt %62 : vector<1x128xf32>
      %cst_56 = arith.constant 9.99999974E-6 : f32
      %74 = vector.broadcast %cst_56 : f32 to vector<1x128xf32>
      %75 = arith.addf %73, %74 : vector<1x128xf32>
      %cst_57 = arith.constant 1.000000e+00 : f32
      %76 = vector.broadcast %cst_57 : f32 to vector<1x128xf32>
      %77 = arith.divf %76, %75 : vector<1x128xf32>
      %78 = math.sqrt %72 : vector<1x128xf32>
      %cst_58 = arith.constant 9.99999974E-6 : f32
      %79 = vector.broadcast %cst_58 : f32 to vector<1x128xf32>
      %80 = arith.addf %78, %79 : vector<1x128xf32>
      %cst_59 = arith.constant 1.000000e+00 : f32
      %81 = vector.broadcast %cst_59 : f32 to vector<1x128xf32>
      %82 = arith.divf %81, %80 : vector<1x128xf32>
      %cst_60 = arith.constant dense<0.000000e+00> : vector<128x128xf32>
      %83 = tpu.matmul %49, %52, %cst_60 {dimension_numbers = #tpu.dot_dimension_numbers<[0], [0], [1], [1], [0, 1, 1, 1], [], []>} : vector<1x128xf32>, vector<1x128xf32>, vector<128x128xf32> -> vector<128x128xf32>
      %cst_61 = arith.constant dense<0.000000e+00> : vector<128x128xf32>
      %84 = tpu.matmul %77, %82, %cst_61 {dimension_numbers = #tpu.dot_dimension_numbers<[0], [0], [1], [1], [0, 1, 1, 1], [], []>} : vector<1x128xf32>, vector<1x128xf32>, vector<128x128xf32> -> vector<128x128xf32>
      %c0_62 = arith.constant 0 : index
      %c0_63 = arith.constant 0 : index
      %85 = vector.load %arg6[%c0_62, %c0_63] : memref<128x128xf32, #tpu.memory_space<vmem>>, vector<128x128xf32>
      %cst_64 = arith.constant 1.600000e+01 : f32
      %86 = vector.broadcast %cst_64 : f32 to vector<128x128xf32>
      %87 = arith.mulf %86, %83 : vector<128x128xf32>
      %88 = arith.subf %85, %87 : vector<128x128xf32>
      %89 = arith.mulf %88, %84 : vector<128x128xf32>
      %cst_65 = arith.constant 1.600000e+01 : f32
      %90 = vector.broadcast %cst_65 : f32 to vector<128x128xf32>
      %91 = arith.divf %89, %90 : vector<128x128xf32>
      %92 = arith.mulf %91, %91 : vector<128x128xf32>
      %93 = vector.shape_cast %92 : vector<128x128xf32> to vector<1x128x128xf32>
      %cst_66 = arith.constant dense<0.000000e+00> : vector<1xf32>
      %94 = vector.multi_reduction <add>, %93, %cst_66 [1, 2] : vector<1x128x128xf32> to vector<1xf32>
      %95 = vector.shape_cast %94 : vector<1xf32> to vector<1x1x1xf32>
      %96 = vector.extract %95[0, 0, 0] : f32 from vector<1x1x1xf32>
      %c0_67 = arith.constant 0 : index
      %c0_68 = arith.constant 0 : index
      %97 = vector.load %arg11[%c0_67, %c0_68] : memref<1x128xf32, #tpu.memory_space<vmem>>, vector<1x128xf32>
      %cst_69 = arith.constant 1.600000e+01 : f32
      %98 = vector.broadcast %cst_69 : f32 to vector<1x128xf32>
      %99 = arith.mulf %98, %49 : vector<1x128xf32>
      %100 = arith.mulf %99, %52 : vector<1x128xf32>
      %101 = arith.subf %97, %100 : vector<1x128xf32>
      %102 = arith.mulf %77, %82 : vector<1x128xf32>
      %103 = arith.mulf %101, %102 : vector<1x128xf32>
      %cst_70 = arith.constant 1.600000e+01 : f32
      %104 = vector.broadcast %cst_70 : f32 to vector<1x128xf32>
      %105 = arith.divf %103, %104 : vector<1x128xf32>
      %cst_71 = arith.constant 1.000000e+00 : f32
      %106 = vector.broadcast %cst_71 : f32 to vector<1x128xf32>
      %107 = arith.subf %105, %106 : vector<1x128xf32>
      %108 = arith.mulf %107, %107 : vector<1x128xf32>
      %109 = vector.shape_cast %108 : vector<1x128xf32> to vector<1x1x128xf32>
      %cst_72 = arith.constant dense<0.000000e+00> : vector<1xf32>
      %110 = vector.multi_reduction <add>, %109, %cst_72 [1, 2] : vector<1x1x128xf32> to vector<1xf32>
      %111 = vector.shape_cast %110 : vector<1xf32> to vector<1x1x1xf32>
      %112 = vector.extract %111[0, 0, 0] : f32 from vector<1x1x1xf32>
      %113 = arith.mulf %105, %105 : vector<1x128xf32>
      %114 = vector.shape_cast %113 : vector<1x128xf32> to vector<1x1x128xf32>
      %cst_73 = arith.constant dense<0.000000e+00> : vector<1xf32>
      %115 = vector.multi_reduction <add>, %114, %cst_73 [1, 2] : vector<1x1x128xf32> to vector<1xf32>
      %116 = vector.shape_cast %115 : vector<1xf32> to vector<1x1x1xf32>
      %117 = vector.extract %116[0, 0, 0] : f32 from vector<1x1x1xf32>
      %118 = arith.cmpi eq, %arg0, %arg1 : i32
      %119 = arith.subf %96, %117 : f32
      %cst_74 = arith.constant 5.000000e-03 : f32
      %120 = arith.mulf %cst_74, %119 : f32
      %121 = arith.addf %112, %120 : f32
      %cst_75 = arith.constant 5.000000e-03 : f32
      %122 = arith.mulf %cst_75, %96 : f32
      %123 = arith.select %118, %121, %122 : f32
      %c0_76 = arith.constant 0 : index
      %c0_77 = arith.constant 0 : index
      %124 = memref.load %arg5[%c0_76, %c0_77] : memref<1x1xf32, #tpu.memory_space<smem>>
      %cst_78 = arith.constant 2.560000e+02 : f32
      %125 = arith.divf %123, %cst_78 : f32
      %126 = arith.addf %124, %125 : f32
      %c0_79 = arith.constant 0 : index
      %c0_80 = arith.constant 0 : index
      %127 = memref.load %arg5[%c0_79, %c0_80] : memref<1x1xf32, #tpu.memory_space<smem>>
      memref.store %126, %arg5[%c0_79, %c0_80] : memref<1x1xf32, #tpu.memory_space<smem>>
    } else {
    }
    return
  }
  func.func @transform_0(%arg0: i32, %arg1: i32, %arg2: i32) -> (i32, i32) {
    %c0_i32 = arith.constant 0 : i32
    return %arg2, %arg0 : i32, i32
  }
  func.func @transform_1(%arg0: i32, %arg1: i32, %arg2: i32) -> (i32, i32) {
    %c0_i32 = arith.constant 0 : i32
    return %arg2, %arg1 : i32, i32
  }
  func.func @transform_2(%arg0: i32, %arg1: i32, %arg2: i32) -> (i32, i32) {
    %c0_i32 = arith.constant 0 : i32
    %c0_i32_0 = arith.constant 0 : i32
    %c0_i32_1 = arith.constant 0 : i32
    return %c0_i32, %c0_i32_0 : i32, i32
  }
}

</mosaic_0001>

<bundles_post_ra>
// kernel: tpu_custom_call.1
= control target key start
LH: loop header
LB: loop body
LE: loop exit
PB: predicated region body
PF: predicated region fallthrough
CT: control target
= control target key end

     0   :  { %s2308_s0 = inlined_call_operand.hbm [shape: f32[16,256], index: 0, kind: input, shape index: {}]   ;;  %s2309_s1 = inlined_call_operand.hbm [shape: f32[16,256], index: 1, kind: input, shape index: {}]   ;;  %s2310_s2 = inlined_call_operand.hbm [shape: f32[1,1], index: 2, kind: output, shape index: {}]  }
   0x1   :  { %2322 = sst [smem:[#allocation22_spill]] %s2308_s0 }
   0x2   :  { %2323 = sst [smem:[#allocation23_spill]] %s2310_s2 }
   0x3   :  { %7 = vsyncpa [#allocation9], 0 }
   0x4   :  { %9 = vsyncpa [#allocation9 + $0x1], 0 }
   0x5   :  { %10 = vsyncpa [#allocation12], 0 }
   0x6   :  { %12 = vsyncpa [#allocation12 + $0x1], 0 }
   0x7   :  { %13 = vsyncpa [#allocation10], 0  ;;  %s1884_s9 = smov 0   ;;  %s1886_s10 = smov 0  }
   0x8   :  { %s1888_s11 = smov 0   ;;  %s1890_s12 = smov 0  }
   0x9   :  { %s1892_s13 = smov 0   ;;  %s1894_s14 = smov 0  }
   0xa   :  { %s1896_s15 = smov 0   ;;  %s1898_s16 = smov 0  }
   0xb   :  { %s1900_s17 = smov 0   ;;  %s1902_s18 = smov 0  }
   0xc   :  { %s1904_s19 = smov 0   ;;  %s1906_s20 = smov 0  }
   0xd   :  { %s1908_s21 = smov 0  }
   0xe LB: > { %2324 = sst [smem:[#allocation17_spill]] %s1838_s15  ;;  %s31_s22 = sadd.s32 1, %s1850_s18  ;;  %s1862_s21 = sphi %s1908_s21, %s19_s21   ;;  %s1858_s20 = sphi %s1906_s20, %s2369_s20   ;;  %s1854_s19 = sphi %s1904_s19, %s2368_s19   ;;  %s1850_s18 = sphi %s1902_s18, %s2367_s18   ;;  %s1846_s17 = sphi %s1900_s17, %s2366_s17   ;;  %s1842_s16 = sphi %s1898_s16, %s2365_s16   ;;  %s1838_s15 = sphi %s1896_s15, %s2364_s15   ;;  %s1834_s14 = sphi %s1894_s14, %s2363_s14   ;;  %s1830_s13 = sphi %s1892_s13, %s2362_s13   ;;  %s1826_s12 = sphi %s1890_s12, %s2361_s12   ;;  %s1822_s11 = sphi %s1888_s11, %s2360_s11   ;;  %s1818_s10 = sphi %s1886_s10, %s2359_s10   ;;  %s1814_s9 = sphi %s1884_s9, %s2358_s9  }
   0xf   : > { %2325 = sst [smem:[#allocation18_spill]] %s1842_s16  ;;  %s2311_s23 = sadd.s32 4294967295, %s1862_s21  }
  0x10   : > { %2326 = sst [smem:[#allocation19_spill]] %s1846_s17  ;;  %p1949_p0 = scmp.ge.s32.totalorder %s31_s22, 2 }
  0x11   : > { %s38_s25 = sadd.s32 1, %s1858_s20  ;;  %p54_p1 = scmp.ne.s32.totalorder %s1834_s14, %s1830_s13 }
  0x12   : > { %s2371_s22 = smov (%p1949_p0, %s31_s22), 0  ;;  %p2314_p2 = scmp.eq.s32.totalorder %s1862_s21, 0 }
  0x13   : > { %2328 = sst [smem:[#allocation20_spill]] %s2371_s22  ;;  %p60_p3 = scmp.ne.s32.totalorder %s1830_s13, %s1826_s12 }
  0x14   : > { %p1965_p4 = scmp.eq.s32.totalorder %s2311_s23, 0  ;;  %p56_p5 = por %p2314_p2, %p54_p1 }
  0x15   : > { %p2313_p7 = scmp.lt.s32.totalorder %s1862_s21, 8  ;;  %s133_s29 = sand.u32 1, %s1834_s14  }
  0x16   : > { %s2329_s27 = scalar_select %p1965_p4, 1, 0 }
  0x17   : > { %p1973_p6 = por %p1965_p4, %p60_p3  ;;  %s2312_s30 = sshll.u32 %s1850_s18, 1 }
  0x18   : > { %s1336_s3 = sshll.u32 %s133_s29, 3  ;;  %s142_s4 = sadd.s32 %s1858_s20, %s2312_s30 }
  0x19   : > { %s2330_s28 = scalar_select %p1973_p6, 1, 0 }
  0x1a   : > { %s1338_s5 = sshll.u32 %s142_s4, 7  ;;  %s137_s6 = scalar_lea.vmem [#allocation8], %s1336_s3 }
  0x1b   : > { %s146_s7 = sshll.u32 %s137_s6, 4  ;;  %s2331_s0 = sld [smem:[#allocation22_spill]]  ;;  %s1988_s7 = int_to_ptr.vmem [resolvable:$true] %s146_s7 }
  0x1c   : > { %p1992_p8 = pnand %p2313_p7, %p56_p5  ;;  %s134_s3 = scalar_lea.sflag [#allocation9], %s133_s29 }
  0x1e   : > { %p1678_p12 = pneg %p1992_p8 }
  0x21   : > { %s1986_s23 = scalar_lea.hbm %s2331_s0, %s1338_s5  ;;  %s1681_s8 = scalar_lea.hbm %s2331_s0, 512 }
  0x22   : > { %s1676_s4 = scalar_lea.hbm %s1986_s23, 128  ;;  %p1682_p3 = scmp.lt.u32.totalorder %s1986_s23, %s2331_s0 }
  0x23   : > { %p1677_p11 = scmp.ne.s32.totalorder %s1986_s23, %s1676_s4  ;;  %p1683_p5 = scmp.lt.u32.totalorder %s1681_s8, %s1676_s4 }
  0x24   : > { %p1685_p2 = scmp.lt.u32.totalorder %s1676_s4, %s1986_s23 }
  0x25   : > { %p1679_p13 = pnand %p1678_p12, %p1677_p11  ;;  %p1684_p7 = por %p1683_p5, %p1682_p3 }
  0x27   : > { %p1680_p1 = pneg %p1679_p13  ;;  %p1686_p9 = por %p1685_p2, %p1684_p7 }
  0x29   : > { %p1687_p10 = pnand %p1686_p9, %p1680_p1 }
  0x2b   : > { %1690 = shalt.err (!%p1687_p10)
}
  0x2c   : > { %s1691_s29 = scalar_lea.vmem %s1988_s7, 128  ;;  %s1864_s5 = smov [#allocation8]  }
  0x2d   : > { %p1692_p11 = scmp.ne.s32.totalorder %s1988_s7, %s1691_s29  ;;  %s1696_s6 = sshll.u32 %s1864_s5, 4  ;;  %s1697_s6 = int_to_ptr.vmem [resolvable:$false] %s1696_s6 }
  0x2e   : > { %s1698_s30 = scalar_lea.vmem %s1697_s6, 256  ;;  %p1699_p4 = scmp.lt.s32.totalorder %s1988_s7, %s1697_s6 }
  0x2f   : > { %p1694_p13 = pnand %p1692_p11, %p1678_p12  ;;  %p1700_p3 = scmp.lt.s32.totalorder %s1698_s30, %s1691_s29 }
  0x31   : > { %p1695_p6 = pneg %p1694_p13  ;;  %p1701_p5 = por %p1700_p3, %p1699_p4 }
  0x33   : > { %p1702_p2 = pnand %p1701_p5, %p1695_p6 }
  0x35   : > { %1705 = shalt.err (!%p1702_p2)
}
  0x36   : > { %1552 = dma.hbm_to_vmem [thread:$0]  (!%p1992_p8), %s1986_s23, 128, %s1988_s7, %s134_s3  }
  0x37   : > { %p2333_p4 = scmp.lt.s32.totalorder %s1862_s21, 9  ;;  %p2334_p6 = scmp.ge.s32.totalorder %s1862_s21, 1 }
  0x38   : > { %s34_s4 = sadd.s32 1, %s1854_s19  ;;  %s42_s8 = ssub.s32 %s1850_s18, %s2371_s22 }
  0x39   : > { %p2027_p7 = pnand %p2334_p6, %p2333_p4  ;;  %s2373_s4 = smov (!%p1949_p0, %s34_s4), %s1854_s19 }
  0x3a   : > { %p82_p9 = scmp.ne.s32.totalorder %s1822_s11, %s1818_s10  ;;  %p36_p10 = scmp.ge.s32.totalorder %s2373_s4, 2 }
  0x3b   : > { %p88_p12 = scmp.ne.s32.totalorder %s1818_s10, %s1814_s9  ;;  %s75_s12 = sadd.s32 1, %s1822_s11 }
  0x3c   : > { %p2336_p1 = scmp.eq.s32.totalorder %s1862_s21, 0  ;;  %s2375_s4 = smov (%p36_p10, %s2373_s4), 0 }
  0x3d   : > { %2338 = sst [smem:[#allocation21_spill]] %s2375_s4  ;;  %s2377_s25 = smov (!%p36_p10, %s38_s25), %s1858_s20 }
  0x3e   : > { %p2044_p8 = por %p82_p9, %p2336_p1  ;;  %s71_s24 = ssub.s32 %s1854_s19, %s2375_s4 }
  0x3f   : > { %p2339_p0 = scmp.ne.s32.totalorder %s2329_s27, 0  ;;  %p40_p13 = scmp.ge.s32.totalorder %s2377_s25, 2 }
  0x40   : > { %s72_s9 = sor.u32 %s71_s24, %s42_s8  ;;  %s153_s3 = sand.u32 1, %s1822_s11  }
  0x41   : > { %p2057_p11 = por %p88_p12, %p2339_p0  ;;  %p73_p3 = scmp.eq.s32.totalorder %s72_s9, 0 }
  0x42   : > { %s2379_s25 = smov (%p40_p13, %s2377_s25), 0  ;;  %s1339_s6 = sshll.u32 %s153_s3, 3 }
  0x43   : > { %s2340_s7 = scalar_select %p2057_p11, 1, 0 }
  0x44   : > { %s2065_s29 = scalar_select %p73_p3, %s1822_s11, %s75_s12  }
  0x45   : > { %s43_s5 = ssub.s32 %s1858_s20, %s2379_s25  ;;  %s2341_s30 = sshll.u32 %s1850_s18, 1 }
  0x46   : > { %s44_s27 = sor.u32 %s43_s5, %s42_s8  ;;  %s162_s0 = sadd.s32 %s1854_s19, %s2341_s30 }
  0x47   : > { %p45_p5 = scmp.eq.s32.totalorder %s44_s27, 0  ;;  %s1341_s4 = sshll.u32 %s162_s0, 7 }
  0x48   : > { %s157_s22 = scalar_lea.vmem [#allocation11], %s1339_s6  ;;  %s2342_s15 = sadd.s32 1, %s1834_s14 }
  0x49   : > { %s166_s2 = sshll.u32 %s157_s22, 4  ;;  %s2080_s17 = scalar_lea.hbm %s2309_s1, %s1341_s4  ;;  %s2082_s2 = int_to_ptr.vmem [resolvable:$true] %s166_s2 }
  0x4a   : > { %s2075_s24 = scalar_select %p45_p5, %s1834_s14, %s2342_s15  }
  0x4b   : > { %p2343_p2 = scmp.lt.s32.totalorder %s1862_s21, 8  ;;  %s154_s15 = scalar_lea.sflag [#allocation12], %s153_s3 }
  0x4c   : > { %s1706_s22 = scalar_lea.hbm %s2080_s17, 128  ;;  %s1711_s8 = scalar_lea.hbm %s2309_s1, 512 }
  0x4d   : > { %p2088_p4 = pnand %p2343_p2, %p2044_p8  ;;  %p1707_p6 = scmp.ne.s32.totalorder %s2080_s17, %s1706_s22 }
  0x4e   : > { %p1712_p1 = scmp.lt.u32.totalorder %s2080_s17, %s2309_s1  ;;  %p1713_p8 = scmp.lt.u32.totalorder %s1711_s8, %s1706_s22 }
  0x4f   : > { %p1708_p9 = pneg %p2088_p4  ;;  %p1715_p13 = scmp.lt.u32.totalorder %s1706_s22, %s2080_s17 }
  0x50   : > { %p1714_p0 = por %p1713_p8, %p1712_p1 }
  0x51   : > { %p1709_p10 = pnand %p1708_p9, %p1707_p6 }
  0x52   : > { %p1716_p3 = por %p1715_p13, %p1714_p0 }
  0x53   : > { %p1710_p12 = pneg %p1709_p10 }
  0x55   : > { %p1717_p5 = pnand %p1716_p3, %p1710_p12 }
  0x57   : > { %1720 = shalt.err (!%p1717_p5)
}
  0x58   : > { %s1721_s3 = scalar_lea.vmem %s2082_s2, 128  ;;  %s1865_s5 = smov [#allocation11]  }
  0x59   : > { %p1722_p2 = scmp.ne.s32.totalorder %s2082_s2, %s1721_s3  ;;  %s1726_s6 = sshll.u32 %s1865_s5, 4  ;;  %s1727_s6 = int_to_ptr.vmem [resolvable:$false] %s1726_s6 }
  0x5a   : > { %s1728_s27 = scalar_lea.vmem %s1727_s6, 256  ;;  %p1729_p11 = scmp.lt.s32.totalorder %s2082_s2, %s1727_s6 }
  0x5b   : > { %p1724_p6 = pnand %p1722_p2, %p1708_p9  ;;  %p1730_p1 = scmp.lt.s32.totalorder %s1728_s27, %s1721_s3 }
  0x5d   : > { %p1725_p10 = pneg %p1724_p6  ;;  %p1731_p8 = por %p1730_p1, %p1729_p11 }
  0x5f   : > { %p1732_p0 = pnand %p1731_p8, %p1725_p10 }
  0x61   : > { %1735 = shalt.err (!%p1732_p0)
}
  0x62   : > { %1555 = dma.hbm_to_vmem [thread:$0]  (!%p2088_p4), %s2080_s17, 128, %s2082_s2, %s154_s15  }
  0x63   : > { %175 = sbr.rel (%p2027_p7) target bundleno = 1147 (0x47b), region = 28  ;;  %s177_s30 = sand.u32 (!%p2027_p7), 1, %s1830_s13  }
  0x64   : > { %s2120_s9 = sshll.u32 (!%p2027_p7), %s177_s30, 3  ;;  %s178_s22 = scalar_lea.sflag (!%p2027_p7), [#allocation9], %s177_s30 }
  0x65   : > { %s181_s16 = scalar_lea.vmem (!%p2027_p7), [#allocation8], %s2120_s9  ;;  %p2345_p9 = scmp.ne.s32.totalorder (!%p2027_p7), %s2330_s28, 0 }
  0x6a   : > { %1801 = dma.done.wait (%p2345_p9), %s178_s22, 128  }
  0x6b   : > { %1803 = vsyncadd (%p2345_p9), %s178_s22, 4294967168  ;;  %s186_s0 = sand.u32 1, %s1818_s10   ;;  %p2346_p7 = scmp.ne.s32.totalorder %s2340_s7, 0 }
  0x6c   : > { %s2128_s2 = sshll.u32 %s186_s0, 3  ;;  %s187_s17 = scalar_lea.sflag [#allocation12], %s186_s0 }
  0x6d   : > { %s190_s26 = scalar_lea.vmem [#allocation11], %s2128_s2 }
  0x6e   : > { %1805 = dma.done.wait (%p2346_p7), %s187_s17, 128  }
  0x6f   : > { %1807 = vsyncadd (%p2346_p7), %s187_s17, 4294967168  ;;  %s2347_s15 = sld [smem:[#allocation19_spill]]  ;;  %s2348_s4 = sld [smem:[#allocation18_spill]] }
  0x70   : > { %s2349_s8 = sld [smem:[#allocation17_spill]]  ;;  %s1866_s28 = smov 0.0  }
  0x75   : > { %p211_p11 = scmp.eq.s32.totalorder %s2347_s15, 0  ;;  %p212_p4 = scmp.eq.s32.totalorder %s2348_s4, 0 }
  0x76   : > { %p215_p13 = scmp.eq.s32.totalorder %s2349_s8, 0  ;;  %p1345_p2 = scmp.ne.s32.totalorder %s2349_s8, 0 }
  0x77   : > { %p213_p12 = pnand %p212_p4, %p211_p11  ;;  %v1867_v0 = vmov (!%p1345_p2), 0.0  }
  0x78   : > { %224 = sbr.rel (%p1345_p2) target bundleno = 131 (0x83), region = 44  ;;  %225 = vst [vmem:[#allocation2] sm:$0xff] (!%p1345_p2), %v1867_v0  ;;  %226 = vst [vmem:[#allocation2 + $0x8] sm:$0xff] (!%p1345_p2), %v1867_v0 }
  0x79   : > { %p214_p3 = pneg %p213_p12  ;;  %227 = vst [vmem:[#allocation2 + $0x10] sm:$0xff] (!%p1345_p2), %v1867_v0  ;;  %228 = vst [vmem:[#allocation2 + $0x18] sm:$0xff] (!%p1345_p2), %v1867_v0 }
  0x7a   : > { %229 = vst [vmem:[#allocation2 + $0x20] sm:$0xff] (!%p1345_p2), %v1867_v0  ;;  %230 = vst [vmem:[#allocation2 + $0x28] sm:$0xff] (!%p1345_p2), %v1867_v0 }
  0x7b   : > { %p216_p5 = pnand %p215_p13, %p214_p3  ;;  %231 = vst [vmem:[#allocation2 + $0x30] sm:$0xff] (!%p1345_p2), %v1867_v0  ;;  %232 = vst [vmem:[#allocation2 + $0x38] sm:$0xff] (!%p1345_p2), %v1867_v0 }
  0x7c   : > { %233 = vst [vmem:[#allocation2 + $0x40] sm:$0xff] (!%p1345_p2), %v1867_v0  ;;  %234 = vst [vmem:[#allocation2 + $0x48] sm:$0xff] (!%p1345_p2), %v1867_v0 }
  0x7d   : > { %1544 = sst [smem:[#allocation13]] (!%p216_p5), %s1866_s28  ;;  %235 = vst [vmem:[#allocation2 + $0x50] sm:$0xff] (!%p1345_p2), %v1867_v0  ;;  %236 = vst [vmem:[#allocation2 + $0x58] sm:$0xff] (!%p1345_p2), %v1867_v0 }
  0x7e   : > { %237 = vst [vmem:[#allocation2 + $0x60] sm:$0xff] (!%p1345_p2), %v1867_v0  ;;  %238 = vst [vmem:[#allocation2 + $0x68] sm:$0xff] (!%p1345_p2), %v1867_v0 }
  0x7f   : > { %239 = vst [vmem:[#allocation2 + $0x70] sm:$0xff] %v1867_v0  ;;  %240 = vst [vmem:[#allocation2 + $0x78] sm:$0xff] %v1867_v0 }
  0x80   : > { %241 = vst [vmem:[#allocation3] sm:$0x1] %v1867_v0  ;;  %242 = vst [vmem:[#allocation4] sm:$0x1] %v1867_v0 }
  0x81   : > { %243 = vst [vmem:[#allocation5] sm:$0x1] %v1867_v0  ;;  %244 = vst [vmem:[#allocation6] sm:$0x1] %v1867_v0 }
  0x82   : > { %245 = vst [vmem:[#allocation7] sm:$0x1] %v1867_v0 }
  0x83 PF: > { %v246_v1 = vld [vmem:[%s181_s16] sm:$0xff]  ;;  %v247_v2 = vld [vmem:[%s190_s26] sm:$0xff]  ;;  %vm296_vm0 = vcmask 64512   ;;  %s2350_s7 = sld [smem:[#allocation17_spill]] }
  0x84   : > { %v542_v3 = vrot.slane %v247_v2, 4  ;;  %v551_v4 = vmul.f32 %v247_v2, %v247_v2  ;;  %264 = vxpose.xlu0.b32.start.end [1/1] (short) %v246_v1, 128  ;;  %v523_v5 = vrot.slane %v246_v1, 4  ;;  %v532_v6 = vmul.f32 %v246_v1, %v246_v1  ;;  %1453 = vmatprep.subr.mxu0 %v247_v2  ;;  %v249_v62 = vld [vmem:[#allocation2 + $0x8] sm:$0xff]  ;;  %v248_v63 = vld [vmem:[#allocation2] sm:$0xff] }
  0x85   : > { %v561_v7 = vmul.f32 %v247_v2, %v246_v1  ;;  %1454 = vmatpush3.msra.mxu0 %v247_v2  ;;  %1531 = vmatprep.subr.mxu1 %v247_v2 }
  0x86   : > { %v543_v8 = vadd.f32 %v542_v3, %v247_v2  ;;  %v552_v9 = vrot.slane %v551_v4, 4  ;;  %v524_v10 = vadd.f32 %v523_v5, %v246_v1  ;;  %v533_v11 = vrot.slane %v532_v6, 4  ;;  %1532 = vmatpush3.msra.mxu1 %v247_v2  ;;  %v250_v5 = vld [vmem:[#allocation2 + $0x10] sm:$0xff] }
  0x87   : > { %v562_v12 = vrot.slane %v561_v7, 4  ;;  %v522_v27 = vld [vmem:[#allocation3] sm:$0x1]  ;;  %v531_v34 = vld [vmem:[#allocation4] sm:$0x1] }
  0x88   : > { %v544_v13 = vrot.slane %v543_v8, 2  ;;  %v553_v14 = vadd.f32 %v552_v9, %v551_v4  ;;  %v525_v15 = vrot.slane %v524_v10, 2  ;;  %v534_v16 = vadd.f32 %v533_v11, %v532_v6  ;;  %v541_v28 = vld [vmem:[#allocation5] sm:$0x1]  ;;  %v550_v35 = vld [vmem:[#allocation6] sm:$0x1] }
  0x89   : > { %v563_v17 = vadd.f32 %v562_v12, %v561_v7  ;;  %v560_v39 = vld [vmem:[#allocation7] sm:$0x1]  ;;  %v251_v4 = vld [vmem:[#allocation2 + $0x18] sm:$0xff]  ;;  %p1362_p6 = scmp.ne.s32.totalorder %s2350_s7, 1 }
  0x8a   : > { %v545_v18 = vadd.f32 %v544_v13, %v543_v8  ;;  %v554_v19 = vrot.slane %v553_v14, 2  ;;  %v526_v20 = vadd.f32 %v525_v15, %v524_v10  ;;  %v535_v21 = vrot.slane %v534_v16, 2  ;;  %v253_v10 = vld [vmem:[#allocation2 + $0x28] sm:$0xff]  ;;  %v252_v11 = vld [vmem:[#allocation2 + $0x20] sm:$0xff]  ;;  %s2351_s12 = sld [smem:[#allocation18_spill]] (!%p1362_p6)  ;;  %s2352_s23 = sld [smem:[#allocation19_spill]] (!%p1362_p6) }
  0x8b   : > { %v564_v22 = vrot.slane %v563_v17, 2  ;;  %vm693_vm1 = vcmask (!%p1362_p6), 1040384   ;;  %vm644_vm6 = vcmask (!%p1362_p6), 7168   ;;  %s1225_s9 = sld [smem:[#allocation13]] (!%p1362_p6) }
  0x8c   : > { %v546_v23 = vrot.slane %v545_v18, 1  ;;  %v555_v24 = vadd.f32 %v554_v19, %v553_v14  ;;  %v527_v25 = vrot.slane %v526_v20, 1  ;;  %v536_v26 = vadd.f32 %v535_v21, %v534_v16  ;;  %v255_v16 = vld [vmem:[#allocation2 + $0x38] sm:$0xff] }
  0x8d   : > { %v565_v29 = vadd.f32 %v564_v22, %v563_v17  ;;  %v254_v17 = vld [vmem:[#allocation2 + $0x30] sm:$0xff]  ;;  %v257_v22 = vld [vmem:[#allocation2 + $0x48] sm:$0xff] }
  0x8e   : > { %v547_v30 = vadd.f32 %v546_v23, %v545_v18  ;;  %v556_v31 = vrot.slane %v555_v24, 1  ;;  %v528_v32 = vadd.f32 %v527_v25, %v526_v20  ;;  %v537_v33 = vrot.slane %v536_v26, 1  ;;  %v256_v23 = vld [vmem:[#allocation2 + $0x40] sm:$0xff] }
  0x8f   : > { %v566_v36 = vrot.slane %v565_v29, 1 }
  0x90   : > { %v548_v37 = vadd.f32 %v547_v30, %v541_v28  ;;  %v557_v38 = vadd.f32 %v556_v31, %v555_v24  ;;  %v529_v40 = vadd.f32 %v528_v32, %v522_v27  ;;  %v538_v41 = vadd.f32 %v537_v33, %v536_v26  ;;  %v259_v28 = vld [vmem:[#allocation2 + $0x58] sm:$0xff]  ;;  %p1219_p10 = scmp.eq.s32.totalorder (!%p1362_p6), %s2352_s23, %s2351_s12 }
  0x91   : > { %v567_v42 = vadd.f32 %v566_v36, %v565_v29  ;;  %v258_v29 = vld [vmem:[#allocation2 + $0x50] sm:$0xff] }
  0x92   : > { %549 = vst [vmem:[#allocation5] sm:$0x1] %v548_v37  ;;  %v558_v43 = vadd.f32 %v557_v38, %v550_v35  ;;  %530 = vst [vmem:[#allocation3] sm:$0x1] %v529_v40  ;;  %v539_v44 = vadd.f32 %v538_v41, %v531_v34  ;;  %v261_v34 = vld [vmem:[#allocation2 + $0x68] sm:$0xff]  ;;  %v260_v35 = vld [vmem:[#allocation2 + $0x60] sm:$0xff] }
  0x93   : > { %v568_v45 = vadd.f32 %v567_v42, %v560_v39  ;;  %v263_v40 = vld [vmem:[#allocation2 + $0x78] sm:$0xff]  ;;  %v262_v41 = vld [vmem:[#allocation2 + $0x70] sm:$0xff] }
  0x94   : > { %559 = vst [vmem:[#allocation6] sm:$0x1] %v558_v43  ;;  %540 = vst [vmem:[#allocation4] sm:$0x1] %v539_v44 }
  0x95   : > { %569 = vst [vmem:[#allocation7] sm:$0x1] %v568_v45 }
 0x104   : > { %v280_v46 = vpop.trf.xlu0 }
 0x105   : > { %1455 = vmatprep.mubr.msk.f32.mxu0 %vm296_vm0, %v280_v46  ;;  %v574_v46 = vld [vmem:[#allocation3] sm:$0x1] (!%p1362_p6) }
 0x108   : > { %v281_v47 = vpop.trf.xlu0 }
 0x109   : > { %1456 = vmatmul.mubr.msk.f32.vlgmr.msra.gmra.mrb[0].mxu0 %vm296_vm0, %v281_v47  ;;  %v576_v47 = vmul.f32 (!%p1362_p6), 0.0625, %v574_v46 }
 0x10b   : > { %612 = vxpose.xlu0.b32.start.end [1/1] (short) (!%p1362_p6), %v576_v47, 128 }
 0x10c   : > { %v282_v48 = vpop.trf.xlu0 }
 0x10d   : > { %1458 = vmatprep.mubr.msk.f32.mxu0 %vm296_vm0, %v282_v48  ;;  %v577_v48 = vld [vmem:[#allocation5] sm:$0x1] (!%p1362_p6) }
 0x110   : > { %v283_v49 = vpop.trf.xlu0 }
 0x111   : > { %1459 = vmatmul.mubr.msk.f32.gmra.mrb[2].mxu0 %vm296_vm0, %v283_v49  ;;  %v2160_v49 = vmul.f32 (!%p1362_p6), 16.0, %v576_v47 }
 0x114   : > { %v284_v50 = vpop.trf.xlu0 }
 0x115   : > { %1461 = vmatprep.mubr.msk.f32.mxu0 %vm296_vm0, %v284_v50  ;;  %v2162_v50 = vmul.f32 (!%p1362_p6), 0.0625, %v577_v48 }
 0x117   : > { %1479 = vmatprep.subr.msk.mxu0 (!%p1362_p6), %vm693_vm1, %v2162_v50 }
 0x118   : > { %v285_v51 = vpop.trf.xlu0  ;;  %1480 = vmatpush3.msk.msra.mxu0 (!%p1362_p6), %vm693_vm1, %v2162_v50 }
 0x119   : > { %1462 = vmatmul.mubr.msk.f32.gmra.mrb[4].mxu0 %vm296_vm0, %v285_v51  ;;  %v581_v51 = vmul.f32 (!%p1362_p6), %v2160_v49, %v576_v47 }
 0x11c   : > { %v286_v52 = vpop.trf.xlu0 }
 0x11d   : > { %1464 = vmatprep.mubr.msk.f32.mxu0 %vm296_vm0, %v286_v52  ;;  %v579_v52 = vld [vmem:[#allocation4] sm:$0x1] (!%p1362_p6) }
 0x120   : > { %v287_v53 = vpop.trf.xlu0 }
 0x121   : > { %1465 = vmatmul.mubr.msk.f32.gmra.mrb[6].mxu0 %vm296_vm0, %v287_v53  ;;  %v582_v53 = vsub.f32 (!%p1362_p6), %v579_v52, %v581_v51 }
 0x124   : > { %v288_v54 = vpop.trf.xlu0 }
 0x125   : > { %1467 = vmatprep.mubr.msk.f32.mxu1 %vm296_vm0, %v288_v54  ;;  %v583_v54 = vmax.f32 (!%p1362_p6), %v582_v53, 0.0 }
 0x128   : > { %v289_v55 = vpop.trf.xlu0 }
 0x129   : > { %1468 = vmatmul.mubr.msk.f32.vlgmr.msra.gmra.mrb[0].mxu1 %vm296_vm0, %v289_v55  ;;  %v585_v55 = vmul.f32 (!%p1362_p6), 0.06666667, %v583_v54 }
 0x12b   : > { %1668 = vrsqrt.f32 (!%p1362_p6), %v585_v55  ;;  %vm594_vm2 = vcmp.eq.f32.partialorder (!%p1362_p6), %v585_v55, inf  ;;  %vm596_vm3 = vcmp.eq.f32.partialorder (!%p1362_p6), %v585_v55, 0.0 }
 0x12c   : > { %v290_v56 = vpop.trf.xlu0 }
 0x12d   : > { %1470 = vmatprep.mubr.msk.f32.mxu1 %vm296_vm0, %v290_v56  ;;  %v587_v56 = vmul.f32 (!%p1362_p6), 16.0, %v2162_v50 }
 0x130   : > { %v291_v57 = vpop.trf.xlu0 }
 0x131   : > { %1471 = vmatmul.mubr.msk.f32.gmra.mrb[2].mxu1 %vm296_vm0, %v291_v57  ;;  %v588_v57 = vmul.f32 (!%p1362_p6), %v587_v56, %v2162_v50 }
 0x134   : > { %v292_v58 = vpop.trf.xlu0 }
 0x135   : > { %1473 = vmatprep.mubr.msk.f32.mxu1 %vm296_vm0, %v292_v58  ;;  %v586_v58 = vld [vmem:[#allocation6] sm:$0x1] (!%p1362_p6) }
 0x138   : > { %v293_v59 = vpop.trf.xlu0 }
 0x139   : > { %1474 = vmatmul.mubr.msk.f32.gmra.mrb[4].mxu1 %vm296_vm0, %v293_v59  ;;  %v589_v59 = vsub.f32 (!%p1362_p6), %v586_v58, %v588_v57 }
 0x13c   : > { %v294_v60 = vpop.trf.xlu0 }
 0x13d   : > { %1476 = vmatprep.mubr.msk.f32.mxu1 %vm296_vm0, %v294_v60  ;;  %v1669_v60 = vpop.eup (!%p1362_p6), %1668 }
 0x140   : > { %v295_v61 = vpop.trf.xlu0 }
 0x141   : > { %1477 = vmatmul.mubr.msk.f32.gmra.mrb[6].mxu1 %vm296_vm0, %v295_v61  ;;  %v590_v61 = vmax.f32 (!%p1362_p6), %v589_v59, 0.0 }
 0x1dc   : > { %v1457_v0 = vpop.f32.mrb[0].mxu0 }
 0x1dd   : > { %v491_v1 = vadd.f32 %v1457_v0, %v249_v62  ;;  %v411_v2 = vpop.f32.mrb[1].mxu0  ;;  %v593_v62 = vmul.f32 (!%p1362_p6), %v1669_v60, %v585_v55  ;;  %v597_v0 = vand.u32 (!%p1362_p6), 2147483648, %v585_v55 }
 0x1de   : > { %v490_v3 = vadd.f32 %v411_v2, %v248_v63  ;;  %v591_v63 = vmul.f32 (!%p1362_p6), 0.06666667, %v590_v61 }
 0x1df   : > { %507 = vst [vmem:[#allocation2 + $0x8] sm:$0xff] %v491_v1  ;;  %v595_v1 = vsel (!%p1362_p6), %vm594_vm2, %v585_v55, %v593_v62 }
 0x1e0   : > { %506 = vst [vmem:[#allocation2] sm:$0xff] %v490_v3  ;;  %1670 = vrsqrt.f32 (!%p1362_p6), %v591_v63  ;;  %v598_v2 = vsel (!%p1362_p6), %vm596_vm3, %v597_v0, %v595_v1  ;;  %vm604_vm4 = vcmp.eq.f32.partialorder (!%p1362_p6), %v591_v63, inf  ;;  %vm606_vm5 = vcmp.eq.f32.partialorder (!%p1362_p6), %v591_v63, 0.0 }
 0x1e1   : > { %v599_v3 = vadd.f32 (!%p1362_p6), 1e-05, %v598_v2 }
 0x1e3   : > { %1672 = vrcp.f32 (!%p1362_p6), %v599_v3 }
 0x1e4   : > { %v1460_v6 = vpop.f32.mrb[2].mxu0 }
 0x1e5   : > { %v493_v7 = vadd.f32 %v1460_v6, %v251_v4  ;;  %v421_v8 = vpop.f32.mrb[3].mxu0  ;;  %v607_v6 = vand.u32 (!%p1362_p6), 2147483648, %v591_v63 }
 0x1e6   : > { %v492_v9 = vadd.f32 %v421_v8, %v250_v5 }
 0x1e7   : > { %509 = vst [vmem:[#allocation2 + $0x18] sm:$0xff] %v493_v7 }
 0x1e8   : > { %508 = vst [vmem:[#allocation2 + $0x10] sm:$0xff] %v492_v9 }
 0x1ea   : > { %v1671_v4 = vpop.eup (!%p1362_p6), %1670 }
 0x1eb   : > { %v603_v5 = vmul.f32 (!%p1362_p6), %v1671_v4, %v591_v63 }
 0x1ec   : > { %v1463_v12 = vpop.f32.mrb[4].mxu0 }
 0x1ed   : > { %v495_v13 = vadd.f32 %v1463_v12, %v253_v10  ;;  %v431_v14 = vpop.f32.mrb[5].mxu0  ;;  %v605_v7 = vsel (!%p1362_p6), %vm604_vm4, %v591_v63, %v603_v5  ;;  %v2171_v10 = vpop.eup (!%p1362_p6), %1672 }
 0x1ee   : > { %v494_v15 = vadd.f32 %v431_v14, %v252_v11  ;;  %v608_v8 = vsel (!%p1362_p6), %vm606_vm5, %v607_v6, %v605_v7  ;;  %842 = vxpose.xlu0.b32.start.end [1/1] (short) (!%p1362_p6), %v2171_v10, 128  ;;  %v628_v12 = vpop.trf.xlu0 (!%p1362_p6)  ;;  %v1071_v7 = vld [vmem:[#allocation2 + $0x8] sm:$0xff] (!%p1362_p6) }
 0x1ef   : > { %511 = vst [vmem:[#allocation2 + $0x28] sm:$0xff] %v495_v13  ;;  %v609_v9 = vadd.f32 (!%p1362_p6), 1e-05, %v608_v8  ;;  %1481 = vmatprep.mubr.msk.f32.mxu0 (!%p1362_p6), %vm644_vm6, %v628_v12  ;;  %v1070_v8 = vld [vmem:[#allocation2] sm:$0xff] (!%p1362_p6) }
 0x1f0   : > { %510 = vst [vmem:[#allocation2 + $0x20] sm:$0xff] %v494_v15 }
 0x1f1   : > { %1674 = vrcp.f32 (!%p1362_p6), %v609_v9 }
 0x1f2   : > { %v629_v13 = vpop.trf.xlu0 (!%p1362_p6) }
 0x1f3   : > { %1482 = vmatmul.mubr.msk.f32.vlgmr.msra.gmra.mrb[0].mxu0 (!%p1362_p6), %vm644_vm6, %v629_v13 }
 0x1f4   : > { %v1466_v18 = vpop.f32.mrb[6].mxu0 }
 0x1f5   : > { %v497_v19 = vadd.f32 %v1466_v18, %v255_v16  ;;  %v441_v20 = vpop.f32.mrb[7].mxu0 }
 0x1f6   : > { %v496_v21 = vadd.f32 %v441_v20, %v254_v17  ;;  %v630_v14 = vpop.trf.xlu0 (!%p1362_p6) }
 0x1f7   : > { %513 = vst [vmem:[#allocation2 + $0x38] sm:$0xff] %v497_v19  ;;  %1484 = vmatprep.mubr.msk.f32.mxu0 (!%p1362_p6), %vm644_vm6, %v630_v14 }
 0x1f8   : > { %512 = vst [vmem:[#allocation2 + $0x30] sm:$0xff] %v496_v21 }
 0x1fa   : > { %v631_v15 = vpop.trf.xlu0 (!%p1362_p6) }
 0x1fb   : > { %v2174_v11 = vpop.eup (!%p1362_p6), %1674  ;;  %1485 = vmatmul.mubr.msk.f32.gmra.mrb[2].mxu0 (!%p1362_p6), %vm644_vm6, %v631_v15 }
 0x1fc   : > { %v1469_v24 = vpop.f32.mrb[0].mxu1  ;;  %1505 = vmatprep.subr.msk.mxu1 (!%p1362_p6), %vm693_vm1, %v2174_v11  ;;  %v1193_v47 = vmul.f32 (!%p1362_p6), %v2174_v11, %v2171_v10 }
 0x1fd   : > { %v499_v25 = vadd.f32 %v1469_v24, %v257_v22  ;;  %v451_v26 = vpop.f32.mrb[1].mxu1  ;;  %1506 = vmatpush3.msk.msra.mxu1 (!%p1362_p6), %vm693_vm1, %v2174_v11 }
 0x1fe   : > { %v498_v27 = vadd.f32 %v451_v26, %v256_v23  ;;  %v632_v16 = vpop.trf.xlu0 (!%p1362_p6) }
 0x1ff   : > { %515 = vst [vmem:[#allocation2 + $0x48] sm:$0xff] %v499_v25  ;;  %1487 = vmatprep.mubr.msk.f32.mxu0 (!%p1362_p6), %vm644_vm6, %v632_v16 }
 0x200   : > { %514 = vst [vmem:[#allocation2 + $0x40] sm:$0xff] %v498_v27 }
 0x202   : > { %v633_v17 = vpop.trf.xlu0 (!%p1362_p6) }
 0x203   : > { %1488 = vmatmul.mubr.msk.f32.gmra.mrb[4].mxu0 (!%p1362_p6), %vm644_vm6, %v633_v17 }
 0x204   : > { %v1472_v30 = vpop.f32.mrb[2].mxu1 }
 0x205   : > { %v501_v31 = vadd.f32 %v1472_v30, %v259_v28  ;;  %v461_v32 = vpop.f32.mrb[3].mxu1 }
 0x206   : > { %v500_v33 = vadd.f32 %v461_v32, %v258_v29  ;;  %v634_v18 = vpop.trf.xlu0 (!%p1362_p6) }
 0x207   : > { %517 = vst [vmem:[#allocation2 + $0x58] sm:$0xff] %v501_v31  ;;  %1490 = vmatprep.mubr.msk.f32.mxu0 (!%p1362_p6), %vm644_vm6, %v634_v18 }
 0x208   : > { %516 = vst [vmem:[#allocation2 + $0x50] sm:$0xff] %v500_v33 }
 0x20a   : > { %v635_v19 = vpop.trf.xlu0 (!%p1362_p6) }
 0x20b   : > { %1491 = vmatmul.mubr.msk.f32.gmra.mrb[6].mxu0 (!%p1362_p6), %vm644_vm6, %v635_v19  ;;  %v1073_v19 = vld [vmem:[#allocation2 + $0x18] sm:$0xff] (!%p1362_p6) }
 0x20c   : > { %v1475_v36 = vpop.f32.mrb[4].mxu1 }
 0x20d   : > { %v503_v37 = vadd.f32 %v1475_v36, %v261_v34  ;;  %v471_v38 = vpop.f32.mrb[5].mxu1 }
 0x20e   : > { %v502_v39 = vadd.f32 %v471_v38, %v260_v35  ;;  %v636_v20 = vpop.trf.xlu0 (!%p1362_p6) }
 0x20f   : > { %519 = vst [vmem:[#allocation2 + $0x68] sm:$0xff] %v503_v37  ;;  %1493 = vmatprep.mubr.msk.f32.mxu0 (!%p1362_p6), %vm644_vm6, %v636_v20 }
 0x210   : > { %518 = vst [vmem:[#allocation2 + $0x60] sm:$0xff] %v502_v39 }
 0x212   : > { %573 = sbr.rel (%p1362_p6) target bundleno = 1126 (0x466), region = 48  ;;  %v637_v21 = vpop.trf.xlu0 (!%p1362_p6) }
 0x213   : > { %1494 = vmatmul.mubr.msk.f32.gmra.mrb[8].mxu0 (!%p1362_p6), %vm644_vm6, %v637_v21  ;;  %v1072_v21 = vld [vmem:[#allocation2 + $0x10] sm:$0xff] (!%p1362_p6) }
 0x214   : > { %v1478_v42 = vpop.f32.mrb[6].mxu1 }
 0x215   : > { %v505_v43 = vadd.f32 %v1478_v42, %v263_v40  ;;  %v481_v44 = vpop.f32.mrb[7].mxu1 }
 0x216   : > { %v504_v45 = vadd.f32 %v481_v44, %v262_v41  ;;  %v638_v22 = vpop.trf.xlu0 (!%p1362_p6)  ;;  %v1191_v44 = vmul.f32 (!%p1362_p6), %v2160_v49, %v2162_v50 }
 0x217   : > { %521 = vst [vmem:[#allocation2 + $0x78] sm:$0xff] %v505_v43  ;;  %1496 = vmatprep.mubr.msk.f32.mxu0 (!%p1362_p6), %vm644_vm6, %v638_v22 }
 0x218   : > { %520 = vst [vmem:[#allocation2 + $0x70] sm:$0xff] %v504_v45  ;;  %v1190_v45 = vld [vmem:[#allocation7] sm:$0x1] (!%p1362_p6) }
 0x219   : > { %v1192_v46 = vsub.f32 %v1190_v45, %v1191_v44 }
 0x21a   : > { %v639_v23 = vpop.trf.xlu0 }
 0x21b   : > { %1497 = vmatmul.mubr.msk.f32.gmra.mrb[10].mxu0 %vm644_vm6, %v639_v23  ;;  %v1194_v48 = vmul.f32 %v1193_v47, %v1192_v46 }
 0x21d   : > { %v2216_v51 = vmul.f32 0.0625, %v1194_v48 }
 0x21e   : > { %v640_v24 = vpop.trf.xlu0 }
 0x21f   : > { %1499 = vmatprep.mubr.msk.f32.mxu0 %vm644_vm6, %v640_v24  ;;  %v1397_v52 = vadd.f32 -1.0, %v2216_v51 }
 0x221   : > { %v1197_v53 = vmul.f32 %v1397_v52, %v1397_v52 }
 0x222   : > { %v641_v25 = vpop.trf.xlu0 }
 0x223   : > { %1500 = vmatmul.mubr.msk.f32.gmra.mrb[12].mxu0 %vm644_vm6, %v641_v25  ;;  %v1198_v54 = vsel %vm693_vm1, %v1197_v53, 0.0  ;;  %v1077_v53 = vld [vmem:[#allocation2 + $0x38] sm:$0xff] }
 0x224   : > { %1199 = vadd.xlane.f32.xlu1 %v1198_v54  ;;  %v1076_v54 = vld [vmem:[#allocation2 + $0x30] sm:$0xff] }
 0x226   : > { %v642_v26 = vpop.trf.xlu0 }
 0x227   : > { %1502 = vmatprep.mubr.msk.f32.mxu0 %vm644_vm6, %v642_v26 }
 0x22a   : > { %v643_v27 = vpop.trf.xlu0 }
 0x22b   : > { %1503 = vmatmul.mubr.msk.f32.gmra.mrb[14].mxu0 %vm644_vm6, %v643_v27 }
 0x26e   : > { %v858_v28 = vpop.trf.xlu0 }
 0x26f   : > { %1507 = vmatprep.mubr.msk.f32.mxu1 %vm644_vm6, %v858_v28 }
 0x272   : > { %v859_v29 = vpop.trf.xlu0 }
 0x273   : > { %1508 = vmatmul.mubr.msk.f32.vlgmr.msra.gmra.mrb[0].mxu1 %vm644_vm6, %v859_v29 }
 0x276   : > { %v860_v30 = vpop.trf.xlu0 }
 0x277   : > { %1510 = vmatprep.mubr.msk.f32.mxu1 %vm644_vm6, %v860_v30 }
 0x27a   : > { %v861_v31 = vpop.trf.xlu0 }
 0x27b   : > { %1511 = vmatmul.mubr.msk.f32.gmra.mrb[2].mxu1 %vm644_vm6, %v861_v31 }
 0x27e   : > { %v862_v32 = vpop.trf.xlu0 }
 0x27f   : > { %1513 = vmatprep.mubr.msk.f32.mxu1 %vm644_vm6, %v862_v32 }
 0x282   : > { %v863_v33 = vpop.trf.xlu0 }
 0x283   : > { %1514 = vmatmul.mubr.msk.f32.gmra.mrb[4].mxu1 %vm644_vm6, %v863_v33 }
 0x286   : > { %v864_v34 = vpop.trf.xlu0 }
 0x287   : > { %1516 = vmatprep.mubr.msk.f32.mxu1 %vm644_vm6, %v864_v34  ;;  %v1075_v34 = vld [vmem:[#allocation2 + $0x28] sm:$0xff] }
 0x28a   : > { %v865_v35 = vpop.trf.xlu0 }
 0x28b   : > { %1517 = vmatmul.mubr.msk.f32.gmra.mrb[6].mxu1 %vm644_vm6, %v865_v35  ;;  %v1074_v35 = vld [vmem:[#allocation2 + $0x20] sm:$0xff] }
 0x28e   : > { %v866_v36 = vpop.trf.xlu0 }
 0x28f   : > { %1519 = vmatprep.mubr.msk.f32.mxu1 %vm644_vm6, %v866_v36 }
 0x292   : > { %v867_v37 = vpop.trf.xlu0 }
 0x293   : > { %1520 = vmatmul.mubr.msk.f32.gmra.mrb[8].mxu1 %vm644_vm6, %v867_v37 }
 0x296   : > { %v868_v38 = vpop.trf.xlu0 }
 0x297   : > { %1522 = vmatprep.mubr.msk.f32.mxu1 %vm644_vm6, %v868_v38 }
 0x29a   : > { %v869_v39 = vpop.trf.xlu0 }
 0x29b   : > { %1523 = vmatmul.mubr.msk.f32.gmra.mrb[10].mxu1 %vm644_vm6, %v869_v39 }
 0x29e   : > { %v870_v40 = vpop.trf.xlu0 }
 0x29f   : > { %1525 = vmatprep.mubr.msk.f32.mxu1 %vm644_vm6, %v870_v40 }
 0x2a2   : > { %v871_v41 = vpop.trf.xlu0 }
 0x2a3   : > { %1526 = vmatmul.mubr.msk.f32.gmra.mrb[12].mxu1 %vm644_vm6, %v871_v41 }
 0x2a6   : > { %v872_v42 = vpop.trf.xlu0 }
 0x2a7   : > { %1528 = vmatprep.mubr.msk.f32.mxu1 %vm644_vm6, %v872_v42 }
 0x2aa   : > { %v873_v43 = vpop.trf.xlu0 }
 0x2ab   : > { %1529 = vmatmul.mubr.msk.f32.gmra.mrb[14].mxu1 %vm644_vm6, %v873_v43 }
 0x2c6   : > { %v1483_v55 = vpop.f32.mrb[0].mxu0 }
 0x2c7   : > { %v763_v56 = vpop.f32.mrb[1].mxu0  ;;  %v1087_v5 = vmul.f32 16.0, %v1483_v55 }
 0x2c8   : > { %v1086_v6 = vmul.f32 16.0, %v763_v56 }
 0x2c9   : > { %v1103_v9 = vsub.f32 %v1071_v7, %v1087_v5 }
 0x2ca   : > { %v1102_v11 = vsub.f32 %v1070_v8, %v1086_v6 }
 0x2ce   : > { %v1486_v57 = vpop.f32.mrb[2].mxu0 }
 0x2cf   : > { %v773_v58 = vpop.f32.mrb[3].mxu0  ;;  %v1089_v15 = vmul.f32 16.0, %v1486_v57 }
 0x2d0   : > { %v1088_v17 = vmul.f32 16.0, %v773_v58 }
 0x2d1   : > { %v1105_v23 = vsub.f32 %v1073_v19, %v1089_v15 }
 0x2d2   : > { %v1104_v26 = vsub.f32 %v1072_v21, %v1088_v17 }
 0x2d6   : > { %v1489_v59 = vpop.f32.mrb[4].mxu0 }
 0x2d7   : > { %v783_v49 = vpop.f32.mrb[5].mxu0  ;;  %v1091_v30 = vmul.f32 16.0, %v1489_v59 }
 0x2d8   : > { %v1090_v31 = vmul.f32 16.0, %v783_v49 }
 0x2d9   : > { %v1107_v37 = vsub.f32 %v1075_v34, %v1091_v30 }
 0x2da   : > { %v1106_v41 = vsub.f32 %v1074_v35, %v1090_v31 }
 0x2de   : > { %v1492_v50 = vpop.f32.mrb[6].mxu0 }
 0x2df   : > { %v793_v60 = vpop.f32.mrb[7].mxu0  ;;  %v1093_v46 = vmul.f32 16.0, %v1492_v50 }
 0x2e0   : > { %v1092_v47 = vmul.f32 16.0, %v793_v60 }
 0x2e1   : > { %v1109_v56 = vsub.f32 %v1077_v53, %v1093_v46 }
 0x2e2   : > { %v1108_v49 = vsub.f32 %v1076_v54, %v1092_v47 }
 0x2e6   : > { %v2220_v61 = vpop.f32.mrb[8].mxu0 }
 0x2e7   : > { %v2222_v62 = vpop.f32.mrb[9].mxu0 }
 0x2ee   : > { %v2224_v63 = vpop.f32.mrb[10].mxu0 }
 0x2ef   : > { %v2226_v0 = vpop.f32.mrb[11].mxu0 }
 0x2f6   : > { %v2228_v1 = vpop.f32.mrb[12].mxu0 }
 0x2f7   : > { %v2230_v2 = vpop.f32.mrb[13].mxu0 }
 0x2fe   : > { %v2232_v3 = vpop.f32.mrb[14].mxu0 }
 0x2ff   : > { %v2234_v4 = vpop.f32.mrb[15].mxu0  ;;  %v1101_v54 = vmul.f32 16.0, %v2232_v3 }
 0x346   : > { %v1509_v10 = vpop.f32.mrb[0].mxu1 }
 0x347   : > { %v1119_v12 = vmul.f32 %v1509_v10, %v1103_v9  ;;  %v991_v13 = vpop.f32.mrb[1].mxu1  ;;  %v1095_v9 = vmul.f32 16.0, %v2220_v61  ;;  %v1094_v10 = vmul.f32 16.0, %v2222_v62  ;;  %v1096_v61 = vmul.f32 16.0, %v2226_v0 }
 0x348   : > { %v1118_v14 = vmul.f32 %v1102_v11, %v991_v13  ;;  %v1079_v11 = vld [vmem:[#allocation2 + $0x48] sm:$0xff] }
 0x349   : > { %v1135_v16 = vmul.f32 0.0625, %v1119_v12  ;;  %v1078_v12 = vld [vmem:[#allocation2 + $0x40] sm:$0xff] }
 0x34a   : > { %v1134_v18 = vmul.f32 0.0625, %v1118_v14  ;;  %v1111_v14 = vsub.f32 %v1079_v11, %v1095_v9 }
 0x34b   : > { %v1151_v20 = vmul.f32 %v1135_v16, %v1135_v16 }
 0x34c   : > { %v1150_v22 = vmul.f32 %v1134_v18, %v1134_v18  ;;  %v1110_v18 = vsub.f32 %v1078_v12, %v1094_v10 }
 0x34e   : > { %v1166_v24 = vadd.f32 %v1151_v20, %v1150_v22  ;;  %v1512_v25 = vpop.f32.mrb[2].mxu1 }
 0x34f   : > { %v1121_v27 = vmul.f32 %v1512_v25, %v1105_v23  ;;  %v1001_v28 = vpop.f32.mrb[3].mxu1  ;;  %v1097_v23 = vmul.f32 16.0, %v2224_v63  ;;  %v1081_v25 = vld [vmem:[#allocation2 + $0x58] sm:$0xff]  ;;  %v1098_v63 = vmul.f32 16.0, %v2230_v2 }
 0x350   : > { %v1120_v29 = vmul.f32 %v1104_v26, %v1001_v28  ;;  %v1080_v26 = vld [vmem:[#allocation2 + $0x50] sm:$0xff] }
 0x351   : > { %v1137_v32 = vmul.f32 0.0625, %v1121_v27  ;;  %v1113_v28 = vsub.f32 %v1081_v25, %v1097_v23 }
 0x352   : > { %v1136_v33 = vmul.f32 0.0625, %v1120_v29 }
 0x353   : > { %v1153_v38 = vmul.f32 %v1137_v32, %v1137_v32  ;;  %v1112_v32 = vsub.f32 %v1080_v26, %v1096_v61 }
 0x354   : > { %v1152_v36 = vmul.f32 %v1136_v33, %v1136_v33 }
 0x356   : > { %v1167_v39 = vadd.f32 %v1166_v24, %v1152_v36  ;;  %v1515_v40 = vpop.f32.mrb[4].mxu1 }
 0x357   : > { %v1123_v42 = vmul.f32 %v1515_v40, %v1107_v37  ;;  %v1011_v43 = vpop.f32.mrb[5].mxu1  ;;  %v1099_v37 = vmul.f32 16.0, %v2228_v1  ;;  %v1082_v40 = vld [vmem:[#allocation2 + $0x60] sm:$0xff]  ;;  %v1100_v1 = vmul.f32 16.0, %v2234_v4  ;;  %v1208_v4 = vmul.f32 %v2216_v51, %v2216_v51 }
 0x358   : > { %v1122_v44 = vmul.f32 %v1106_v41, %v1011_v43  ;;  %v1168_v45 = vadd.f32 %v1167_v39, %v1153_v38  ;;  %v1083_v39 = vld [vmem:[#allocation2 + $0x68] sm:$0xff]  ;;  %v1114_v46 = vsub.f32 %v1082_v40, %v1098_v63 }
 0x359   : > { %v1139_v48 = vmul.f32 0.0625, %v1123_v42  ;;  %v1115_v42 = vsub.f32 %v1083_v39, %v1099_v37 }
 0x35a   : > { %v1138_v52 = vmul.f32 0.0625, %v1122_v44 }
 0x35b   : > { %v1155_v57 = vmul.f32 %v1139_v48, %v1139_v48 }
 0x35c   : > { %v1154_v55 = vmul.f32 %v1138_v52, %v1138_v52 }
 0x35e   : > { %v1169_v58 = vadd.f32 %v1168_v45, %v1154_v55  ;;  %v1518_v59 = vpop.f32.mrb[6].mxu1 }
 0x35f   : > { %v1125_v5 = vmul.f32 %v1518_v59, %v1109_v56  ;;  %v1021_v6 = vpop.f32.mrb[7].mxu1  ;;  %v1085_v56 = vld [vmem:[#allocation2 + $0x78] sm:$0xff] }
 0x360   : > { %v1124_v7 = vmul.f32 %v1108_v49, %v1021_v6  ;;  %v1170_v8 = vadd.f32 %v1169_v58, %v1155_v57  ;;  %v1084_v57 = vld [vmem:[#allocation2 + $0x70] sm:$0xff]  ;;  %v1117_v59 = vsub.f32 %v1085_v56, %v1101_v54 }
 0x361   : > { %v1141_v50 = vmul.f32 0.0625, %v1125_v5  ;;  %v1116_v49 = vsub.f32 %v1084_v57, %v1100_v1 }
 0x362   : > { %v1140_v60 = vmul.f32 0.0625, %v1124_v7 }
 0x363   : > { %v1157_v15 = vmul.f32 %v1141_v50, %v1141_v50 }
 0x364   : > { %v1156_v13 = vmul.f32 %v1140_v60, %v1140_v60 }
 0x366   : > { %v1171_v16 = vadd.f32 %v1170_v8, %v1156_v13  ;;  %v1521_v17 = vpop.f32.mrb[8].mxu1 }
 0x367   : > { %v1127_v19 = vmul.f32 %v1521_v17, %v1111_v14  ;;  %v1031_v20 = vpop.f32.mrb[9].mxu1 }
 0x368   : > { %v1126_v21 = vmul.f32 %v1110_v18, %v1031_v20  ;;  %v1172_v22 = vadd.f32 %v1171_v16, %v1157_v15  ;;  %v1209_v15 = vsel %vm693_vm1, %v1208_v4, 0.0  ;;  %v1200_v16 = vpop.xlane.xlu1 %1199 }
 0x369   : > { %v1143_v24 = vmul.f32 0.0625, %v1127_v19  ;;  %v1201_v17 = vrot.slane %v1200_v16, 4 }
 0x36a   : > { %v1142_v62 = vmul.f32 0.0625, %v1126_v21 }
 0x36b   : > { %v1159_v29 = vmul.f32 %v1143_v24, %v1143_v24  ;;  %v1202_v18 = vadd.f32 %v1201_v17, %v1200_v16 }
 0x36c   : > { %v1158_v27 = vmul.f32 %v1142_v62, %v1142_v62 }
 0x36d   : > { %v1203_v19 = vrot.slane %v1202_v18, 2 }
 0x36e   : > { %v1173_v30 = vadd.f32 %v1172_v22, %v1158_v27  ;;  %v1524_v31 = vpop.f32.mrb[10].mxu1 }
 0x36f   : > { %v1129_v33 = vmul.f32 %v1524_v31, %v1113_v28  ;;  %v1041_v34 = vpop.f32.mrb[11].mxu1  ;;  %v1204_v61 = vadd.f32 %v1203_v19, %v1202_v18 }
 0x370   : > { %v1128_v35 = vmul.f32 %v1112_v32, %v1041_v34  ;;  %v1174_v36 = vadd.f32 %v1173_v30, %v1159_v29 }
 0x371   : > { %v1145_v38 = vmul.f32 0.0625, %v1129_v33  ;;  %v1205_v51 = vrot.slane %v1204_v61, 1 }
 0x372   : > { %v1144_v0 = vmul.f32 0.0625, %v1128_v35 }
 0x373   : > { %v1161_v43 = vmul.f32 %v1145_v38, %v1145_v38  ;;  %v1206_v31 = vadd.f32 %v1205_v51, %v1204_v61 }
 0x374   : > { %v1160_v41 = vmul.f32 %v1144_v0, %v1144_v0 }
 0x376   : > { %v1175_v44 = vadd.f32 %v1174_v36, %v1160_v41  ;;  %v1527_v45 = vpop.f32.mrb[12].mxu1 }
 0x377   : > { %v1131_v47 = vmul.f32 %v1527_v45, %v1115_v42  ;;  %v1051_v48 = vpop.f32.mrb[13].mxu1 }
 0x378   : > { %v1130_v52 = vmul.f32 %v1114_v46, %v1051_v48  ;;  %v1176_v53 = vadd.f32 %v1175_v44, %v1161_v43 }
 0x379   : > { %v1147_v55 = vmul.f32 0.0625, %v1131_v47 }
 0x37a   : > { %v1146_v2 = vmul.f32 0.0625, %v1130_v52 }
 0x37b   : > { %v1163_v5 = vmul.f32 %v1147_v55, %v1147_v55 }
 0x37c   : > { %v1162_v58 = vmul.f32 %v1146_v2, %v1146_v2 }
 0x37e   : > { %v1177_v6 = vadd.f32 %v1176_v53, %v1162_v58  ;;  %v1530_v7 = vpop.f32.mrb[14].mxu1 }
 0x37f   : > { %v1133_v8 = vmul.f32 %v1530_v7, %v1117_v59  ;;  %v1061_v9 = vpop.f32.mrb[15].mxu1 }
 0x380   : > { %v1132_v10 = vmul.f32 %v1116_v49, %v1061_v9  ;;  %v1178_v50 = vadd.f32 %v1177_v6, %v1163_v5 }
 0x381   : > { %v1149_v60 = vmul.f32 0.0625, %v1133_v8 }
 0x382   : > { %v1148_v11 = vmul.f32 0.0625, %v1132_v10 }
 0x383   : > { %v1165_v3 = vmul.f32 %v1149_v60, %v1149_v60 }
 0x384   : > { %v1164_v12 = vmul.f32 %v1148_v11, %v1148_v11 }
 0x386   : > { %v1179_v13 = vadd.f32 %v1178_v50, %v1164_v12 }
 0x388   : > { %v1180_v14 = vadd.f32 %v1179_v13, %v1165_v3 }
 0x38a   : > { %1181 = vadd.xlane.f32.xlu1 %v1180_v14 }
 0x38e   : > { %1210 = vadd.xlane.f32.xlu1 %v1209_v15 }
 0x417   : > { %v1182_v20 = vpop.xlane.xlu1 %1181 }
 0x418   : > { %v1183_v21 = vrot.slane %v1182_v20, 4 }
 0x41a   : > { %v1184_v22 = vadd.f32 %v1183_v21, %v1182_v20 }
 0x41b   : > { %v1211_v23 = vpop.xlane.xlu1 %1210 }
 0x41c   : > { %v1185_v24 = vrot.slane %v1184_v22, 2  ;;  %v1212_v62 = vrot.slane %v1211_v23, 4 }
 0x41e   : > { %v1213_v25 = vadd.f32 %v1212_v62, %v1211_v23  ;;  %v1186_v26 = vadd.f32 %v1185_v24, %v1184_v22 }
 0x420   : > { %v1214_v27 = vrot.slane %v1213_v25, 2  ;;  %v1187_v28 = vrot.slane %v1186_v26, 1 }
 0x422   : > { %v1215_v29 = vadd.f32 %v1214_v27, %v1213_v25  ;;  %v1188_v30 = vadd.f32 %v1187_v28, %v1186_v26 }
 0x424   : > { %1533 = vpush %v1188_v30  ;;  %v1216_v32 = vrot.slane %v1215_v29, 1 }
 0x425   : > { %1535 = vpush %v1206_v31 }
 0x426   : > { %v1217_v33 = vadd.f32 %v1216_v32, %v1215_v29 }
 0x428   : > { %1537 = vpush %v1217_v33 }
 0x455   : > { %s1534_s3 = spop %1533 }
 0x456   : > { %s1536_s5 = spop %1535  ;;  %s1223_s22 = smul.f32 0.005, %s1534_s3 }
 0x459   : > { %s1538_s6 = spop %1537 }
 0x45a   : > { %s1220_s27 = ssub.f32 %s1534_s3, %s1538_s6 }
 0x45c   : > { %s1221_s30 = smul.f32 0.005, %s1220_s27 }
 0x45e   : > { %s1222_s16 = sadd.f32 %s1536_s5, %s1221_s30 }
 0x460   : > { %s2381_s16 = smov (!%p1219_p10, %s1222_s16), %s1223_s22 }
 0x461   : > { %s1228_s0 = smul.f32 0.00390625, %s2381_s16 }
 0x463   : > { %s1229_s2 = sadd.f32 %s1228_s0, %s1225_s9 }
 0x465   : > { %1231 = sst [smem:[#allocation13]] %s1229_s2 }
 0x466 PF: > { %s2353_s17 = sadd.s32 4294967295, %s1862_s21   ;;  %s2354_s4 = sld [smem:[#allocation23_spill]] }
 0x467   : > { %p1557_p1 = scmp.eq.s32.totalorder %s2353_s17, 7 }
 0x46c   : > { %s1736_s8 = scalar_lea.hbm %s2354_s4, 16 }
 0x46d   : > { %p1737_p8 = scmp.ne.s32.totalorder %s2354_s4, %s1736_s8  ;;  %p1742_p7 = scmp.lt.u32.totalorder %s1736_s8, %s2354_s4 }
 0x46f   : > { %p1738_p0 = pnand %p1737_p8, %p1557_p1 }
 0x471   : > { %p1739_p9 = pneg %p1738_p0 }
 0x473   : > { %p1744_p11 = pnand %p1742_p7, %p1739_p9 }
 0x475   : > { %1747 = shalt.err (!%p1744_p11)
}
 0x476   : > { %s1868_s3 = smov [#allocation13]  }
 0x477   : > { %1546 = dma.smem_to_hbm (%p1557_p1), %s1868_s3, 16, %s2354_s4, [#allocation10]  }
 0x478   : > { %1809 = dma.done.wait (%p1557_p1), [#allocation10], 16  }
 0x479   : > { %1811 = vsyncadd (%p1557_p1), [#allocation10], 4294967280 }
 0x47a   : > { %1245 = sfence }
 0x47b PF: > { %s19_s21 = sadd.s32 1, %s1862_s21   ;;  %s2356_s30 = sld [smem:[#allocation20_spill]] }
 0x47c   : > { %p2264_p4 = scmp.ge.s32.totalorder %s19_s21, 10   ;;  %s2357_s22 = sld [smem:[#allocation21_spill]] }
 0x47d   : > { %s2358_s9 = smov %s1818_s10  ;;  %s2359_s10 = smov %s1822_s11 }
 0x47e   : > { %s2360_s11 = smov %s2065_s29  ;;  %s2361_s12 = smov %s1830_s13 }
 0x47f   : > { %s2362_s13 = smov %s1834_s14  ;;  %s2363_s14 = smov %s2075_s24 }
 0x480   : > { %s2364_s15 = smov %s1850_s18  ;;  %s2365_s16 = smov %s1854_s19 }
 0x481   : > { %s2366_s17 = smov %s1858_s20  ;;  %s2367_s18 = smov %s2356_s30 }
 0x482   : > { %s2368_s19 = smov %s2357_s22  ;;  %s2369_s20 = smov %s2379_s25 }
 0x483   :  { %18 = sbr.rel (!%p2264_p4) target bundleno = 14 (0xe), region = 92 }
 0x48a   :  { %1251 = vsyncpa [#allocation9], 1 }
 0x48b   :  { %1253 = vsyncpa [#allocation9 + $0x1], 1 }
 0x48c   :  { %1254 = vsyncpa [#allocation12], 1 }
 0x48d   :  { %1256 = vsyncpa [#allocation12 + $0x1], 1 }
 0x48e   :  { %1257 = vsyncpa [#allocation10], 1 }
 0x48f   :  { %1259 = vsyncpa [#allocation10 + $0x1], 1 }

</bundles_post_ra>
